<compile_context>
chip_gen: v7x
topology: tpu7x:2x2x1
jax: 0.10.0
libtpu: 0.0.40
codegen_flags: <defaults>
</compile_context>

<pallas_src>
import jax
import jax.numpy as jnp
from jax.experimental import pallas as pl
from jax.experimental.pallas import tpu as pltpu


def policy_mlp_kernel(x_ref, w1_ref, b1_ref, w2_ref, b2_ref, w3_ref, b3_ref, o_ref):
    # MXU operand dtype follows the (pre-cast) weight dtype; accumulation and
    # all elementwise math stay f32.
    mxu_dtype = w1_ref.dtype

    # Layer 1: Linear(input_size, 128) + ReLU
    x = x_ref[...].astype(mxu_dtype)
    h1 = jnp.dot(x, w1_ref[...], preferred_element_type=jnp.float32) + b1_ref[...]
    h1 = jnp.maximum(h1, 0.0)

    # Layer 2: Linear(128, 128) + ReLU
    h2 = jnp.dot(h1.astype(mxu_dtype), w2_ref[...],
                 preferred_element_type=jnp.float32) + b2_ref[...]
    h2 = jnp.maximum(h2, 0.0)

    # Layer 3: Linear(128, output_size) + softmax over the last axis.
    logits = jnp.dot(h2.astype(mxu_dtype), w3_ref[...],
                     preferred_element_type=jnp.float32) + b3_ref[...]
    m = jnp.max(logits, axis=-1, keepdims=True)
    e = jnp.exp(logits - m)
    denom = jnp.sum(e, axis=-1, keepdims=True)
    # Exact normalization (approx reciprocal failed the tolerance check and the
    # downstream consumer is action sampling, which wants rows summing to 1).
    o_ref[...] = (e / denom).astype(o_ref.dtype)


def _choose_batch_tile(B, block_rows):
    """Sublane-aligned batch tile with >=2 grid steps for mid/large batches."""
    if B <= 16:
        return B  # single step; block equals the full batch dim (always legal)
    # At most block_rows, at least 2 grid steps, multiple of 8 (sublane tile).
    return min(block_rows, pl.cdiv(pl.cdiv(B, 2), 8) * 8)


def policy_network_forward(x, params, *, block_rows=1024, mxu_dtype=jnp.bfloat16):
    """x: (B, input_size) f32. Returns (B, output_size) f32 softmax probabilities."""
    w1, b1, w2, b2, w3, b3 = params
    B, F = x.shape
    OUT = w3.shape[1]

    # Cast weights once (halves resident-weight DMA bytes, feeds the MXU at
    # bf16 rate on v5e/v6e/v7x). Biases stay f32; activations are cast in-kernel.
    if mxu_dtype is not None:
        w1, w2, w3 = (w.astype(mxu_dtype) for w in (w1, w2, w3))

    TB = _choose_batch_tile(B, block_rows)
    grid = (pl.cdiv(B, TB),)  # partial last block is masked by Pallas

    # Weights/biases: full-array blocks with a constant index_map -> resident
    # in VMEM across all grid steps (no re-DMA).
    def resident(a):
        return pl.BlockSpec(a.shape, lambda i: (0, 0))

    out = pl.pallas_call(
        policy_mlp_kernel,
        out_shape=jax.ShapeDtypeStruct((B, OUT), jnp.float32),
        grid_spec=pltpu.PrefetchScalarGridSpec(
            num_scalar_prefetch=0,
            grid=grid,
            in_specs=[
                pl.BlockSpec((TB, F), lambda i: (i, 0)),
                resident(w1), resident(b1),
                resident(w2), resident(b2),
                resident(w3), resident(b3),
            ],
            # Narrow, un-padded output block: only the OUT real lanes leave the
            # kernel (no 128-lane write amplification, no wrapper slice).
            out_specs=pl.BlockSpec((TB, OUT), lambda i: (i, 0)),
        ),
        compiler_params=pltpu.CompilerParams(
            dimension_semantics=("parallel",),
        ),
    )(x, w1, b1, w2, b2, w3, b3)
    return out


def init_params(key, input_size, hidden, output_size):
    # Deterministic init mimicking nn.Linear's U(-1/sqrt(fan_in), 1/sqrt(fan_in)).
    ks = jax.random.split(key, 6)

    def lin(kw, kb, fan_in, fan_out):
        bound = 1.0 / jnp.sqrt(jnp.float32(fan_in))
        w = jax.random.uniform(kw, (fan_in, fan_out), jnp.float32, -bound, bound)
        b = jax.random.uniform(kb, (1, fan_out), jnp.float32, -bound, bound)
        return w, b

    w1, b1 = lin(ks[0], ks[1], input_size, hidden)
    w2, b2 = lin(ks[2], ks[3], hidden, hidden)
    w3, b3 = lin(ks[4], ks[5], hidden, output_size)
    return (w1, b1, w2, b2, w3, b3)


def reference_forward(x, params, mxu_dtype=jnp.bfloat16):
    """Pure-JAX reference. mxu_dtype=None -> full f32 matmuls."""
    w1, b1, w2, b2, w3, b3 = params

    def dot(a, w):
        if mxu_dtype is not None:
            a, w = a.astype(mxu_dtype), w.astype(mxu_dtype)
        return jnp.dot(a, w, preferred_element_type=jnp.float32)

    h1 = jnp.maximum(dot(x, w1) + b1, 0.0)
    h2 = jnp.maximum(dot(h1, w2) + b2, 0.0)
    return jax.nn.softmax(dot(h2, w3) + b3, axis=-1)


if __name__ == "__main__":
    key = jax.random.PRNGKey(0)
    kx, kp, kx2 = jax.random.split(key, 3)

    batch = 8
    input_size = 16   # flattened gridworld state
    hidden = 128
    output_size = 4   # movement actions

    x = jax.random.normal(kx, (batch, input_size), dtype=jnp.float32)
    params = init_params(kp, input_size, hidden, output_size)

    out = jax.block_until_ready(policy_network_forward(x, params))
    assert out.shape == (batch, output_size)
    # Tight check vs. a reference using the same bf16-operand / f32-accum dots.
    ref_matched = reference_forward(x, params, mxu_dtype=jnp.bfloat16)
    assert jnp.allclose(out, ref_matched, atol=5e-3, rtol=5e-3)
    # Loose sanity check vs. the pure-f32 reference (bf16 operand quantization).
    ref_f32 = reference_forward(x, params, mxu_dtype=None)
    assert jnp.allclose(out, ref_f32, atol=5e-2, rtol=5e-2)
    # Softmax rows normalize exactly (up to f32 rounding) with the exact divide.
    assert jnp.allclose(jnp.sum(out, axis=-1), 1.0, atol=1e-4)

    # Exercise the multi-step batch grid + masked partial last block.
    big_batch = 200
    xb = jax.random.normal(kx2, (big_batch, input_size), dtype=jnp.float32)
    out_b = jax.block_until_ready(
        policy_network_forward(xb, params, block_rows=64))
    assert out_b.shape == (big_batch, output_size)
    ref_b = reference_forward(xb, params, mxu_dtype=jnp.bfloat16)
    assert jnp.allclose(out_b, ref_b, atol=5e-3, rtol=5e-3)
    assert jnp.allclose(jnp.sum(out_b, axis=-1), 1.0, atol=1e-4)

    print("KERNEL_OK")
</pallas_src>

<mosaic_0001>
module attributes {stable_mosaic.version = 11 : i64} {
  func.func @policy_mlp_kernel(%arg0: i32, %arg1: memref<8x16xf32, #tpu.memory_space<vmem>>, %arg2: memref<16x128xbf16, #tpu.memory_space<vmem>>, %arg3: memref<1x128xf32, #tpu.memory_space<vmem>>, %arg4: memref<128x128xbf16, #tpu.memory_space<vmem>>, %arg5: memref<1x128xf32, #tpu.memory_space<vmem>>, %arg6: memref<128x4xbf16, #tpu.memory_space<vmem>>, %arg7: memref<1x4xf32, #tpu.memory_space<vmem>>, %arg8: memref<8x4xf32, #tpu.memory_space<vmem>>) attributes {dimension_semantics = [#tpu.dimension_semantics<parallel>], iteration_bounds = array<i64: 1>, scalar_prefetch = 0 : i64, scratch_operands = 0 : i64, tpu.core_type = #tpu.core_type<tc>, window_params = [{transform_indices = @transform_0, window_bounds = array<i64: 8, 16>}, {pipeline_mode = #tpu.pipeline_mode<synchronous>, transform_indices = @transform_1, window_bounds = array<i64: 16, 128>}, {pipeline_mode = #tpu.pipeline_mode<synchronous>, transform_indices = @transform_2, window_bounds = array<i64: 1, 128>}, {pipeline_mode = #tpu.pipeline_mode<synchronous>, transform_indices = @transform_3, window_bounds = array<i64: 128, 128>}, {pipeline_mode = #tpu.pipeline_mode<synchronous>, transform_indices = @transform_4, window_bounds = array<i64: 1, 128>}, {pipeline_mode = #tpu.pipeline_mode<synchronous>, transform_indices = @transform_5, window_bounds = array<i64: 128, 4>}, {pipeline_mode = #tpu.pipeline_mode<synchronous>, transform_indices = @transform_6, window_bounds = array<i64: 1, 4>}, {transform_indices = @transform_7, window_bounds = array<i64: 8, 4>}]} {
    %c0 = arith.constant 0 : index
    %c0_0 = arith.constant 0 : index
    %0 = vector.load %arg1[%c0, %c0_0] : memref<8x16xf32, #tpu.memory_space<vmem>>, vector<8x16xf32>
    %1 = arith.truncf %0 : vector<8x16xf32> to vector<8x16xbf16>
    %c0_1 = arith.constant 0 : index
    %c0_2 = arith.constant 0 : index
    %2 = vector.load %arg2[%c0_1, %c0_2] : memref<16x128xbf16, #tpu.memory_space<vmem>>, vector<16x128xbf16>
    %cst = arith.constant dense<0.000000e+00> : vector<8x128xf32>
    %3 = tpu.matmul %1, %2, %cst {dimension_numbers = #tpu.dot_dimension_numbers<[1], [0], [0], [1], [0, 0, 1, 1], [], []>} : vector<8x16xbf16>, vector<16x128xbf16>, vector<8x128xf32> -> vector<8x128xf32>
    %c0_3 = arith.constant 0 : index
    %c0_4 = arith.constant 0 : index
    %4 = vector.load %arg3[%c0_3, %c0_4] : memref<1x128xf32, #tpu.memory_space<vmem>>, vector<1x128xf32>
    %5 = vector.broadcast %4 : vector<1x128xf32> to vector<8x128xf32>
    %6 = arith.addf %3, %5 : vector<8x128xf32>
    %cst_5 = arith.constant 0.000000e+00 : f32
    %7 = vector.broadcast %cst_5 : f32 to vector<8x128xf32>
    %8 = arith.maximumf %6, %7 : vector<8x128xf32>
    %9 = arith.truncf %8 : vector<8x128xf32> to vector<8x128xbf16>
    %c0_6 = arith.constant 0 : index
    %c0_7 = arith.constant 0 : index
    %10 = vector.load %arg4[%c0_6, %c0_7] : memref<128x128xbf16, #tpu.memory_space<vmem>>, vector<128x128xbf16>
    %cst_8 = arith.constant dense<0.000000e+00> : vector<8x128xf32>
    %11 = tpu.matmul %9, %10, %cst_8 {dimension_numbers = #tpu.dot_dimension_numbers<[1], [0], [0], [1], [0, 0, 1, 1], [], []>} : vector<8x128xbf16>, vector<128x128xbf16>, vector<8x128xf32> -> vector<8x128xf32>
    %c0_9 = arith.constant 0 : index
    %c0_10 = arith.constant 0 : index
    %12 = vector.load %arg5[%c0_9, %c0_10] : memref<1x128xf32, #tpu.memory_space<vmem>>, vector<1x128xf32>
    %13 = vector.broadcast %12 : vector<1x128xf32> to vector<8x128xf32>
    %14 = arith.addf %11, %13 : vector<8x128xf32>
    %cst_11 = arith.constant 0.000000e+00 : f32
    %15 = vector.broadcast %cst_11 : f32 to vector<8x128xf32>
    %16 = arith.maximumf %14, %15 : vector<8x128xf32>
    %17 = arith.truncf %16 : vector<8x128xf32> to vector<8x128xbf16>
    %c0_12 = arith.constant 0 : index
    %c0_13 = arith.constant 0 : index
    %18 = vector.load %arg6[%c0_12, %c0_13] : memref<128x4xbf16, #tpu.memory_space<vmem>>, vector<128x4xbf16>
    %cst_14 = arith.constant dense<0.000000e+00> : vector<8x4xf32>
    %19 = tpu.matmul %17, %18, %cst_14 {dimension_numbers = #tpu.dot_dimension_numbers<[1], [0], [0], [1], [0, 0, 1, 1], [], []>} : vector<8x128xbf16>, vector<128x4xbf16>, vector<8x4xf32> -> vector<8x4xf32>
    %c0_15 = arith.constant 0 : index
    %c0_16 = arith.constant 0 : index
    %20 = vector.load %arg7[%c0_15, %c0_16] : memref<1x4xf32, #tpu.memory_space<vmem>>, vector<1x4xf32>
    %21 = vector.broadcast %20 : vector<1x4xf32> to vector<8x4xf32>
    %22 = arith.addf %19, %21 : vector<8x4xf32>
    %cst_17 = arith.constant dense<0xFF800000> : vector<8xf32>
    %23 = vector.multi_reduction <maximumf>, %22, %cst_17 [1] : vector<8x4xf32> to vector<8xf32>
    %24 = vector.shape_cast %23 : vector<8xf32> to vector<8x1xf32>
    %25 = vector.broadcast %24 : vector<8x1xf32> to vector<8x4xf32>
    %26 = arith.subf %22, %25 : vector<8x4xf32>
    %27 = math.exp %26 : vector<8x4xf32>
    %cst_18 = arith.constant dense<0.000000e+00> : vector<8xf32>
    %28 = vector.multi_reduction <add>, %27, %cst_18 [1] : vector<8x4xf32> to vector<8xf32>
    %29 = vector.shape_cast %28 : vector<8xf32> to vector<8x1xf32>
    %30 = vector.broadcast %29 : vector<8x1xf32> to vector<8x4xf32>
    %31 = arith.divf %27, %30 : vector<8x4xf32>
    %c0_19 = arith.constant 0 : index
    %c0_20 = arith.constant 0 : index
    %32 = vector.load %arg8[%c0_19, %c0_20] : memref<8x4xf32, #tpu.memory_space<vmem>>, vector<8x4xf32>
    tpu.vector_store %arg8[%c0_19, %c0_20], %31 {strides = array<i32>} : memref<8x4xf32, #tpu.memory_space<vmem>>, vector<8x4xf32>,
    return
  }
  func.func @transform_0(%arg0: i32) -> (i32, i32) {
    %c0_i32 = arith.constant 0 : i32
    %c0_i32_0 = arith.constant 0 : i32
    return %arg0, %c0_i32 : i32, i32
  }
  func.func @transform_1(%arg0: i32) -> (i32, i32) {
    %c0_i32 = arith.constant 0 : i32
    %c0_i32_0 = arith.constant 0 : i32
    %c0_i32_1 = arith.constant 0 : i32
    return %c0_i32, %c0_i32_0 : i32, i32
  }
  func.func @transform_2(%arg0: i32) -> (i32, i32) {
    %c0_i32 = arith.constant 0 : i32
    %c0_i32_0 = arith.constant 0 : i32
    %c0_i32_1 = arith.constant 0 : i32
    return %c0_i32, %c0_i32_0 : i32, i32
  }
  func.func @transform_3(%arg0: i32) -> (i32, i32) {
    %c0_i32 = arith.constant 0 : i32
    %c0_i32_0 = arith.constant 0 : i32
    %c0_i32_1 = arith.constant 0 : i32
    return %c0_i32, %c0_i32_0 : i32, i32
  }
  func.func @transform_4(%arg0: i32) -> (i32, i32) {
    %c0_i32 = arith.constant 0 : i32
    %c0_i32_0 = arith.constant 0 : i32
    %c0_i32_1 = arith.constant 0 : i32
    return %c0_i32, %c0_i32_0 : i32, i32
  }
  func.func @transform_5(%arg0: i32) -> (i32, i32) {
    %c0_i32 = arith.constant 0 : i32
    %c0_i32_0 = arith.constant 0 : i32
    %c0_i32_1 = arith.constant 0 : i32
    return %c0_i32, %c0_i32_0 : i32, i32
  }
  func.func @transform_6(%arg0: i32) -> (i32, i32) {
    %c0_i32 = arith.constant 0 : i32
    %c0_i32_0 = arith.constant 0 : i32
    %c0_i32_1 = arith.constant 0 : i32
    return %c0_i32, %c0_i32_0 : i32, i32
  }
  func.func @transform_7(%arg0: i32) -> (i32, i32) {
    %c0_i32 = arith.constant 0 : i32
    %c0_i32_0 = arith.constant 0 : i32
    return %arg0, %c0_i32 : i32, i32
  }
}

</mosaic_0001>

<bundles_post_ra>
// kernel: tpu_custom_call.1
= control target key start
LH: loop header
LB: loop body
LE: loop exit
PB: predicated region body
PF: predicated region fallthrough
CT: control target
= control target key end

     0   :  { %12 = vsyncpa [#allocation3], 0  ;;  %s483_s24 = smov [#allocation2]   ;;  %s626_s0 = inlined_call_operand.vmem [shape: f32[8,16], index: 0, kind: input, shape index: {}]   ;;  %s627_s1 = inlined_call_operand.hbm [shape: bf16[16,128], index: 1, kind: input, shape index: {}]   ;;  %s628_s2 = inlined_call_operand.vmem [shape: f32[1,128], index: 2, kind: input, shape index: {}]   ;;  %s629_s3 = inlined_call_operand.vmem [shape: bf16[128,128], index: 3, kind: input, shape index: {}]   ;;  %s630_s4 = inlined_call_operand.vmem [shape: f32[1,128], index: 4, kind: input, shape index: {}]   ;;  %s631_s5 = inlined_call_operand.vmem [shape: bf16[128,4], index: 5, kind: input, shape index: {}]   ;;  %s632_s6 = inlined_call_operand.vmem [shape: f32[1,4], index: 6, kind: input, shape index: {}]   ;;  %s633_s7 = inlined_call_operand.vmem [shape: f32[8,4], index: 7, kind: output, shape index: {}]  }
   0x1   :  { %s20_s25 = sshll.u32 %s483_s24, 4  ;;  %s459_s28 = scalar_lea.hbm %s627_s1, 128  ;;  %s21_s25 = int_to_ptr.vmem [resolvable:$true] %s20_s25 }
   0x2   :  { %p460_p0 = scmp.ne.s32.totalorder %s627_s1, %s459_s28  ;;  %p463_p1 = scmp.lt.u32.totalorder %s459_s28, %s627_s1 }
   0x4   :  { %p465_p2 = pnand %p463_p1, %p460_p0 }
   0x6   :  { %468 = shalt.err (!%p465_p2)
}
   0x7   :  { %s469_s10 = scalar_lea.vmem %s21_s25, 128  ;;  %p474_p4 = scmp.lt.s32.totalorder %s21_s25, %s21_s25 }
   0x8   :  { %p470_p3 = scmp.ne.s32.totalorder %s21_s25, %s469_s10  ;;  %p475_p5 = scmp.lt.s32.totalorder %s469_s10, %s469_s10 }
   0xa   :  { %p476_p6 = por %p475_p5, %p474_p4 }
   0xc   :  { %p477_p7 = pnand %p476_p6, %p470_p3 }
   0xe   :  { %480 = shalt.err (!%p477_p7)
}
   0xf   :  { %s484_s11 = smov 64   ;;  %s485_s12 = smov 4  }
  0x10   :  { %26 = dma.hbm_to_vmem [thread:$0]  %s627_s1, 128, %s21_s25, [#allocation3], %s484_s11, %s484_s11, %s485_s12  }
  0x11   :  { %481 = dma.done.wait [#allocation3], 128  }
  0x12   :  { %482 = vsyncadd [#allocation3], 4294967168  ;;  %v486_v0 = vmov 0.0   ;;  %vm487_vm0 = vmmov 0   ;;  %v438_v1 = vld [vmem:[#allocation2] sm:$0xff]   ;;  %vm58_vm1 = vcmask 130048  }
  0x13   :  { %387 = vmatprep.subr.bf16.mxu0 %v486_v0  ;;  %389 = vmatprep.mubr.msk.bf16.mxu0 %vm487_vm0, %v486_v0  ;;  %v41_v2 = vld [vmem:[%s626_s0] sm:$0xff]  ;;  %v440_v5 = vld [vmem:[%s629_s3 + $0x8] sm:$0xff]   ;;  %v441_v6 = vld [vmem:[%s629_s3 + $0x10] sm:$0xff]   ;;  %vm328_vm2 = vcmask 31744  }
  0x14   :  { %393 = vmatprep.subr.bf16.mxu1 %v486_v0  ;;  %409 = vmatprep.mubr.msk.bf16.mxu1 %vm487_vm0, %v486_v0  ;;  %v42_v3 = vpack.c.bf16 %v41_v2, %v41_v2  ;;  %v439_v4 = vld [vmem:[%s629_s3] sm:$0xff]   ;;  %v442_v7 = vld [vmem:[%s629_s3 + $0x18] sm:$0xff]   ;;  %v444_v9 = vld [vmem:[%s629_s3 + $0x28] sm:$0xff]  }
  0x15   :  { %388 = vmatpush3.bf16.msra.mxu0 %v438_v1  ;;  %394 = vmatpush3.bf16.msra.mxu1 %v439_v4  ;;  %v443_v8 = vld [vmem:[%s629_s3 + $0x20] sm:$0xff]   ;;  %v445_v10 = vld [vmem:[%s629_s3 + $0x30] sm:$0xff]   ;;  %v446_v11 = vld [vmem:[%s629_s3 + $0x38] sm:$0xff]  }
  0x16   :  { %413 = vmatprep.subr.bf16.mxu0 %v486_v0  ;;  %395 = vmatprep.subr.bf16.mxu1 %v486_v0  ;;  %v447_v12 = vld [vmem:[%s631_s5] sm:$0xff]   ;;  %v448_v13 = vld [vmem:[%s631_s5 + $0x8] sm:$0xff]   ;;  %v449_v14 = vld [vmem:[%s631_s5 + $0x10] sm:$0xff]  }
  0x17   :  { %v450_v15 = vld [vmem:[%s631_s5 + $0x18] sm:$0xff]   ;;  %v451_v16 = vld [vmem:[%s631_s5 + $0x20] sm:$0xff]   ;;  %v452_v17 = vld [vmem:[%s631_s5 + $0x28] sm:$0xff]  }
  0x18   :  { %390 = vmatmul.mubr.msk.bf16.vlgmr.msra.gmra.mrb[0].mxu0 %vm58_vm1, %v42_v3  ;;  %v346_v18 = vld [vmem:[%s628_s2] ss:$0 sm:$0xff]  ;;  %v453_v26 = vld [vmem:[%s631_s5 + $0x30] sm:$0xff]   ;;  %v454_v27 = vld [vmem:[%s631_s5 + $0x38] sm:$0xff]  }
  0x19   :  { %429 = vmatprep.mubr.msk.bf16.mxu0 %vm487_vm0, %v486_v0  ;;  %396 = vmatpush3.bf16.msra.mxu1 %v440_v5  ;;  %v349_v28 = vld [vmem:[%s630_s4] ss:$0 sm:$0xff] }
  0x1a   :  { %397 = vmatprep.subr.bf16.mxu1 %v486_v0  ;;  %414 = vmatpush3.bf16.msra.mxu0 %v447_v12  ;;  %v358_v36 = vld [vmem:[%s632_s6] ss:$0 sm:$0xff] }
  0x1b   :  { %415 = vmatprep.subr.bf16.mxu0 %v486_v0 }
  0x1d   :  { %398 = vmatpush3.bf16.msra.mxu1 %v441_v6 }
  0x1e   :  { %399 = vmatprep.subr.bf16.mxu1 %v486_v0  ;;  %416 = vmatpush3.bf16.msra.mxu0 %v448_v13 }
  0x1f   :  { %417 = vmatprep.subr.bf16.mxu0 %v486_v0 }
  0x21   :  { %400 = vmatpush3.bf16.msra.mxu1 %v442_v7 }
  0x22   :  { %401 = vmatprep.subr.bf16.mxu1 %v486_v0  ;;  %418 = vmatpush3.bf16.msra.mxu0 %v449_v14 }
  0x23   :  { %419 = vmatprep.subr.bf16.mxu0 %v486_v0 }
  0x25   :  { %402 = vmatpush3.bf16.msra.mxu1 %v443_v8 }
  0x26   :  { %403 = vmatprep.subr.bf16.mxu1 %v486_v0  ;;  %420 = vmatpush3.bf16.msra.mxu0 %v450_v15 }
  0x27   :  { %421 = vmatprep.subr.bf16.mxu0 %v486_v0 }
  0x29   :  { %404 = vmatpush3.bf16.msra.mxu1 %v444_v9 }
  0x2a   :  { %405 = vmatprep.subr.bf16.mxu1 %v486_v0  ;;  %422 = vmatpush3.bf16.msra.mxu0 %v451_v16 }
  0x2b   :  { %423 = vmatprep.subr.bf16.mxu0 %v486_v0 }
  0x2d   :  { %406 = vmatpush3.bf16.msra.mxu1 %v445_v10 }
  0x2e   :  { %407 = vmatprep.subr.bf16.mxu1 %v486_v0  ;;  %424 = vmatpush3.bf16.msra.mxu0 %v452_v17 }
  0x2f   :  { %425 = vmatprep.subr.bf16.mxu0 %v486_v0 }
  0x31   :  { %408 = vmatpush3.bf16.msra.mxu1 %v446_v11 }
  0x32   :  { %426 = vmatpush3.bf16.msra.mxu0 %v453_v26 }
  0x33   :  { %427 = vmatprep.subr.bf16.mxu0 %v486_v0 }
  0x36   :  { %428 = vmatpush3.bf16.msra.mxu0 %v454_v27 }
  0xeb   :  { %v96_v19 = vpop.f32.mrb[0].mxu0 }
  0xec   :  { %v97_v20 = vadd.f32 %v346_v18, %v96_v19  ;;  %v391_v21 = vpop.f32.mrb[1].mxu0 }
  0xed   :  { %v99_v22 = vpop.f32.mrb[2].mxu0 }
  0xee   :  { %v102_v23 = vmax.f32 %v97_v20, 0.0  ;;  %v392_v24 = vpop.f32.mrb[3].mxu0 }
  0xf0   :  { %v103_v25 = vpack.c.bf16 %v102_v23, %v102_v23 }
  0xf2   :  { %410 = vmatmul.mubr.bf16.vlgmr.msra.gmra.mrb[0].mxu1 %v103_v25 }
 0x1c5   :  { %v209_v29 = vpop.f32.mrb[0].mxu1 }
 0x1c6   :  { %v210_v30 = vadd.f32 %v349_v28, %v209_v29  ;;  %v411_v31 = vpop.f32.mrb[1].mxu1 }
 0x1c7   :  { %v212_v32 = vpop.f32.mrb[2].mxu1 }
 0x1c8   :  { %v215_v33 = vmax.f32 %v210_v30, 0.0  ;;  %v412_v34 = vpop.f32.mrb[3].mxu1 }
 0x1ca   :  { %v216_v35 = vpack.c.bf16 %v215_v33, %v215_v33 }
 0x1cc   :  { %430 = vmatmul.mubr.bf16.vlgmr.msra.gmra.mrb[4].mxu0 %v216_v35 }
 0x29f   :  { %v322_v37 = vpop.f32.mrb[4].mxu0 }
 0x2a0   :  { %v323_v38 = vadd.f32 %v358_v36, %v322_v37  ;;  %v431_v39 = vpop.f32.mrb[5].mxu0 }
 0x2a1   :  { %v325_v40 = vpop.f32.mrb[6].mxu0 }
 0x2a2   :  { %v432_v41 = vpop.f32.mrb[7].mxu0  ;;  %v329_v42 = vsel %vm328_vm2, %v323_v38, -inf }
 0x2a3   :  { %330 = vmax.xlane.f32.xlu0 %v329_v42 }
 0x330   :  { %v331_v43 = vpop.xlane.xlu0 %330 }
 0x331   :  { %v332_v44 = vsub.f32 %v323_v38, %v331_v43 }
 0x333   :  { %v333_v45 = vmul.f32 1.442695, %v332_v44 }
 0x335   :  { %455 = vpow2.f32 %v333_v45 }
 0x33f   :  { %v456_v46 = vpop.eup %455 }
 0x340   :  { %v335_v47 = vsel %vm328_vm2, %v456_v46, 0.0 }
 0x341   :  { %336 = vadd.xlane.f32.xlu0 %v335_v47 }
 0x3ce   :  { %v337_v48 = vpop.xlane.xlu0 %336 }
 0x3cf   :  { %457 = vrcp.f32 %v337_v48 }
 0x3d9   :  { %v458_v49 = vpop.eup %457 }
 0x3da   :  { %v339_v50 = vmul.f32 %v458_v49, %v456_v46 }
 0x3dc   :  { %340 = vst.msk [vmem:[%s633_s7] sm:$0xff] %vm328_vm2, %v339_v50 }
 0x3dd   :  { %345 = vsyncpa [#allocation3], 1 }

</bundles_post_ra>
